<compile_context>
chip_gen: v6e
topology: v6e:2x2x1
jax: 0.10.0
libtpu: 0.0.40
codegen_flags: <defaults>
</compile_context>

<pallas_src>
import jax
import jax.numpy as jnp
from jax.experimental import pallas as pl
from jax.experimental.pallas import tpu as pltpu


# --------------------------------------------------------------------------------------
# helpers
# --------------------------------------------------------------------------------------

def _vmem_budgets():
    """Generation-aware (block_budget_bytes, vmem_limit_bytes)."""
    cap = None
    try:
        cap = getattr(pltpu.get_tpu_info(), "vmem_capacity_bytes", None)
    except Exception:
        cap = None
    if cap is None:
        cap = 64 * 1024 * 1024                       # assume the tightest (v7x)
    if cap >= 100 * 1024 * 1024:                     # v5e / v6e: 128 MiB physical VMEM
        return 16 * 1024 * 1024, 96 * 1024 * 1024
    return 8 * 1024 * 1024, 56 * 1024 * 1024         # v7x: 64 MiB physical VMEM


def _pick_bt(B, slab_bytes, budget_bytes):
    """Largest divisor of B whose x-block fits the budget, preferring >=2 (even) grid steps
    so both v7x TensorCores get balanced work.  Returns None if even bt=1 does not fit."""
    fits = [d for d in range(1, B + 1) if B % d == 0 and d * slab_bytes <= budget_bytes]
    if not fits:
        return None
    for want_even, want_min2 in ((True, True), (False, True), (False, False)):
        cands = []
        for d in fits:
            steps = B // d
            if want_min2 and steps < 2:
                continue
            if want_even and steps % 2 != 0:
                continue
            cands.append(d)
        if cands:
            return max(cands)
    return max(fits)


def _pick_chunk_generic(n, target):
    """Smallest split count k with k | n and n/k <= target (returns n if n <= target)."""
    for k in range((n + target - 1) // target, n + 1):
        if n % k == 0:
            return n // k
    return n


def _pick_chunk_nchw(HW):
    """In-kernel lane-axis chunk: prefer 256 (keeps the hoisted gate broadcast and the
    partial squeeze accumulator <=256 lanes), then 128; else whole / generic split."""
    if HW <= 256:
        return HW
    if HW % 256 == 0:
        return 256
    if HW % 128 == 0:
        return 128
    # Unaligned HW: stores/slices are partially masked; channels-last path is preferred
    # for these shapes when C is 128-aligned (see layout selection below).
    return _pick_chunk_generic(HW, 256)


def _pick_hw_tile(HW, C, itemsize, budget_bytes):
    """HW tile for the two-pass fallback: largest divisor fitting the budget, preferring
    multiples of 128 (lane-aligned blocks)."""
    fits = [d for d in range(1, HW + 1) if HW % d == 0 and C * d * itemsize <= budget_bytes]
    if not fits:
        return 1
    aligned = [d for d in fits if d % 128 == 0]
    # TODO(synk): if HW has no 128-multiple divisor at these sizes, the unaligned tile may
    # need padding for best store efficiency; correctness is unaffected.
    return max(aligned) if aligned else max(fits)


# --------------------------------------------------------------------------------------
# kernel bodies (fused single-pass)
# --------------------------------------------------------------------------------------

def _make_se_kernel_nchw(bt, C, HW, hw_chunk):
    """x block (bt, C, HW): HW on the lane axis; gate broadcast along lanes."""
    n_chunks = HW // hw_chunk

    def se_kernel(x_ref, w1_ref, w2_ref, o_ref):
        # ---- Squeeze: elementwise f32 partial accumulation (VPU), single XLU reduce ----
        part = x_ref[:, :, 0:hw_chunk].astype(jnp.float32)
        for ci in range(1, n_chunks):
            sl = slice(ci * hw_chunk, (ci + 1) * hw_chunk)       # static slice -> free view
            part = part + x_ref[:, :, sl].astype(jnp.float32)
        y = jnp.sum(part, axis=-1) * jnp.float32(1.0 / HW)       # (bt, C)

        # ---- Excitation: two tiny bias-free linears + sigmoid, all f32 ----
        h = jnp.maximum(jnp.dot(y, w1_ref[...], preferred_element_type=jnp.float32), 0.0)
        s = jax.nn.sigmoid(jnp.dot(h, w2_ref[...], preferred_element_type=jnp.float32))

        # Hoisted <=256-lane gate broadcast, reused by every scale chunk (no CSE in JAX).
        s_b = jnp.broadcast_to(s[:, :, None], (bt, C, hw_chunk))

        # ---- Scale: chunked multiply + store (f32 compute, io-dtype only at the store) ----
        for ci in range(n_chunks):
            sl = slice(ci * hw_chunk, (ci + 1) * hw_chunk)
            o_ref[:, :, sl] = (x_ref[:, :, sl].astype(jnp.float32) * s_b).astype(o_ref.dtype)

    return se_kernel


def _make_se_kernel_nhwc(bt, C, HW, hw_chunk):
    """x block (bt, HW, C): C on the lane axis -> lane-dense stores for unaligned/small HW."""
    n_chunks = HW // hw_chunk

    def se_kernel(x_ref, w1_ref, w2_ref, o_ref):
        part = x_ref[:, 0:hw_chunk, :].astype(jnp.float32)
        for ci in range(1, n_chunks):
            sl = slice(ci * hw_chunk, (ci + 1) * hw_chunk)
            part = part + x_ref[:, sl, :].astype(jnp.float32)
        y = jnp.sum(part, axis=1) * jnp.float32(1.0 / HW)        # (bt, C) sublane reduce

        h = jnp.maximum(jnp.dot(y, w1_ref[...], preferred_element_type=jnp.float32), 0.0)
        s = jax.nn.sigmoid(jnp.dot(h, w2_ref[...], preferred_element_type=jnp.float32))

        s_b = jnp.broadcast_to(s[:, None, :], (bt, hw_chunk, C)) # sublane broadcast

        for ci in range(n_chunks):
            sl = slice(ci * hw_chunk, (ci + 1) * hw_chunk)
            o_ref[:, sl, :] = (x_ref[:, sl, :].astype(jnp.float32) * s_b).astype(o_ref.dtype)

    return se_kernel


# --------------------------------------------------------------------------------------
# wrapper
# --------------------------------------------------------------------------------------

def se_block(x, w1_t, w2_t, *, io_dtype=None, layout="auto",
             block_budget_bytes=None, vmem_limit_bytes=None, alias_input=False):
    """SEBlock forward.

    x    : (B, C, H, W)  (NCHW, like PyTorch)
    w1_t : (C, C//r)     -- transpose of fc1.weight (fc1 = Linear(C, C//r, bias=False))
    w2_t : (C//r, C)     -- transpose of fc2.weight (fc2 = Linear(C//r, C, bias=False))
    io_dtype     : optional HBM-boundary dtype (e.g. jnp.bfloat16) to halve HBM traffic;
                   gate math / accumulation stays f32.  Output is returned in io_dtype.
    layout       : "auto" | "nchw" | "nhwc".
    alias_input  : reuse x's HBM buffer for the output (only if x is dead afterwards).
    """
    B, C, H, W = x.shape
    HW = H * W

    dflt_budget, dflt_limit = _vmem_budgets()
    if block_budget_bytes is None:
        block_budget_bytes = dflt_budget
    if vmem_limit_bytes is None:
        vmem_limit_bytes = dflt_limit

    io_dtype = jnp.dtype(io_dtype) if io_dtype is not None else jnp.dtype(x.dtype)
    w1_t = w1_t.astype(jnp.float32)
    w2_t = w2_t.astype(jnp.float32)

    x2 = x.reshape(B, C, HW)                       # free reshape, spatial dims flattened
    if x2.dtype != io_dtype:
        x2 = x2.astype(io_dtype)
    itemsize = io_dtype.itemsize
    slab_bytes = C * HW * itemsize

    def _cparams(dims):
        return pltpu.CompilerParams(dimension_semantics=dims,
                                    vmem_limit_bytes=vmem_limit_bytes)

    bt = _pick_bt(B, slab_bytes, block_budget_bytes)

    # ---------------- two-pass fallback: a single (C, HW) slab exceeds the budget -------
    if bt is None:
        hw_tile = _pick_hw_tile(HW, C, itemsize, block_budget_bytes)
        n_hw = HW // hw_tile
        inv_hw = 1.0 / HW

        def reduce_gate_kernel(x_ref, w1_ref, w2_ref, g_ref, acc_ref):
            hi = pl.program_id(1)

            @pl.when(hi == 0)
            def _():
                acc_ref[...] = jnp.zeros_like(acc_ref)

            acc_ref[...] += jnp.sum(x_ref[...].astype(jnp.float32), axis=-1)   # (1, C)

            @pl.when(hi == pl.num_programs(1) - 1)
            def _():
                y = acc_ref[...] * jnp.float32(inv_hw)
                h = jnp.maximum(
                    jnp.dot(y, w1_ref[...], preferred_element_type=jnp.float32), 0.0)
                s = jax.nn.sigmoid(
                    jnp.dot(h, w2_ref[...], preferred_element_type=jnp.float32))
                g_ref[...] = s[:, :, None]                                     # (1, C, 1)

        gate = pl.pallas_call(
            reduce_gate_kernel,
            out_shape=jax.ShapeDtypeStruct((B, C, 1), jnp.float32),
            grid_spec=pltpu.PrefetchScalarGridSpec(
                num_scalar_prefetch=0,
                grid=(B, n_hw),
                in_specs=[
                    pl.BlockSpec((1, C, hw_tile), lambda b, h: (b, 0, h)),
                    pl.BlockSpec(w1_t.shape, lambda b, h: (0, 0)),
                    pl.BlockSpec(w2_t.shape, lambda b, h: (0, 0)),
                ],
                out_specs=pl.BlockSpec((1, C, 1), lambda b, h: (b, 0, 0)),
                scratch_shapes=[pltpu.VMEM((1, C), jnp.float32)],
            ),
            compiler_params=_cparams(("parallel", "arbitrary")),
        )(x2, w1_t, w2_t)

        def scale_kernel(x_ref, g_ref, o_ref):
            o_ref[...] = (x_ref[...].astype(jnp.float32) * g_ref[...]).astype(o_ref.dtype)

        call_kwargs = {"input_output_aliases": {0: 0}} if alias_input else {}
        out3 = pl.pallas_call(
            scale_kernel,
            out_shape=jax.ShapeDtypeStruct((B, C, HW), io_dtype),
            grid_spec=pltpu.PrefetchScalarGridSpec(
                num_scalar_prefetch=0,
                grid=(B, n_hw),
                in_specs=[
                    pl.BlockSpec((1, C, hw_tile), lambda b, h: (b, 0, h)),
                    pl.BlockSpec((1, C, 1), lambda b, h: (b, 0, 0)),
                ],
                out_specs=pl.BlockSpec((1, C, hw_tile), lambda b, h: (b, 0, h)),
            ),
            compiler_params=_cparams(("parallel", "parallel")),
            **call_kwargs,
        )(x2, gate)
        return out3.reshape(B, C, H, W)

    # ---------------- fused single-pass path --------------------------------------------
    if layout == "auto":
        # Lane-dense stores are the biggest single lever: if HW is not 128-aligned but C
        # is (typical SE: large C, tiny HW), process channels-last.  NOTE: the wrapper
        # transpose costs an extra HBM pass; for channels-last surrounding models it fuses.
        layout = "nhwc" if (HW % 128 != 0 and C % 128 == 0) else "nchw"

    call_kwargs = {"input_output_aliases": {0: 0}} if alias_input else {}

    if layout == "nhwc":
        x_in = jnp.transpose(x2, (0, 2, 1))                        # (B, HW, C)
        hw_chunk = _pick_chunk_generic(HW, 256)
        kernel = _make_se_kernel_nhwc(bt, C, HW, hw_chunk)
        blk = (bt, HW, C)
        out3 = pl.pallas_call(
            kernel,
            out_shape=jax.ShapeDtypeStruct((B, HW, C), io_dtype),
            grid_spec=pltpu.PrefetchScalarGridSpec(
                num_scalar_prefetch=0,
                grid=(B // bt,),
                in_specs=[
                    pl.BlockSpec(blk, lambda b: (b, 0, 0)),        # x batch tile
                    pl.BlockSpec(w1_t.shape, lambda b: (0, 0)),    # resident weights
                    pl.BlockSpec(w2_t.shape, lambda b: (0, 0)),
                ],
                out_specs=pl.BlockSpec(blk, lambda b: (b, 0, 0)),
            ),
            compiler_params=_cparams(("parallel",)),
            **call_kwargs,
        )(x_in, w1_t, w2_t)
        return jnp.transpose(out3, (0, 2, 1)).reshape(B, C, H, W)

    # NCHW path
    hw_chunk = _pick_chunk_nchw(HW)
    kernel = _make_se_kernel_nchw(bt, C, HW, hw_chunk)
    blk = (bt, C, HW)
    out3 = pl.pallas_call(
        kernel,
        out_shape=jax.ShapeDtypeStruct((B, C, HW), io_dtype),
        grid_spec=pltpu.PrefetchScalarGridSpec(
            num_scalar_prefetch=0,
            grid=(B // bt,),
            in_specs=[
                pl.BlockSpec(blk, lambda b: (b, 0, 0)),            # x batch tile
                pl.BlockSpec(w1_t.shape, lambda b: (0, 0)),        # resident weights
                pl.BlockSpec(w2_t.shape, lambda b: (0, 0)),
            ],
            out_specs=pl.BlockSpec(blk, lambda b: (b, 0, 0)),
        ),
        compiler_params=_cparams(("parallel",)),
        **call_kwargs,
    )(x2, w1_t, w2_t)
    return out3.reshape(B, C, H, W)


# --------------------------------------------------------------------------------------
# reference + tests
# --------------------------------------------------------------------------------------

def _reference(x, w1, w2):
    y = jnp.mean(x, axis=(2, 3))
    y = jax.nn.sigmoid(jnp.maximum(y @ w1.T, 0.0) @ w2.T)
    return x * y[:, :, None, None]


if __name__ == "__main__":
    key = jax.random.PRNGKey(0)

    # ---- Case 1: module-sized toy shape (B=2, C=4, 16x16), reduction=2, f32 exact ----
    B, C, H, W = 2, 4, 16, 16
    Cr = C // 2
    kx, k1, k2, key = jax.random.split(key, 4)
    x = jax.random.normal(kx, (B, C, H, W), dtype=jnp.float32)
    # PyTorch nn.Linear weights are (out_features, in_features); pass transposes.
    w1 = jax.random.normal(k1, (Cr, C), dtype=jnp.float32) * 0.5
    w2 = jax.random.normal(k2, (C, Cr), dtype=jnp.float32) * 0.5

    out = jax.block_until_ready(se_block(x, w1.T, w2.T))
    ref = _reference(x, w1, w2)
    assert jnp.allclose(out, ref, atol=1e-5, rtol=1e-5), "mismatch (case 1: f32 nchw)"

    # ---- Case 2: multi-step grid + chunked spatial path (B=4, C=8, 32x32, tiny budget) ----
    B2, C2, H2, W2 = 4, 8, 32, 32                   # HW=1024 -> hw_chunk=256, 4 chunks
    Cr2 = C2 // 2
    kx2, k3, k4, key = jax.random.split(key, 4)
    x2 = jax.random.normal(kx2, (B2, C2, H2, W2), dtype=jnp.float32)
    w1b = jax.random.normal(k3, (Cr2, C2), dtype=jnp.float32) * 0.5
    w2b = jax.random.normal(k4, (C2, Cr2), dtype=jnp.float32) * 0.5
    out2 = jax.block_until_ready(
        se_block(x2, w1b.T, w2b.T, block_budget_bytes=C2 * H2 * W2 * 4))
    ref2 = _reference(x2, w1b, w2b)
    assert jnp.allclose(out2, ref2, atol=1e-5, rtol=1e-5), "mismatch (case 2: chunked)"

    # ---- Case 3: bf16 I/O path (HBM bytes halved; f32 accumulation/gate) ----
    out3 = jax.block_until_ready(se_block(x, w1.T, w2.T, io_dtype=jnp.bfloat16))
    assert out3.dtype == jnp.bfloat16
    assert jnp.allclose(out3.astype(jnp.float32), ref, atol=5e-2, rtol=5e-2), \
        "mismatch (case 3: bf16 io)"

    # ---- Case 4: channels-last path (HW=49 not 128-aligned, C=128 aligned) ----
    B4, C4, H4, W4 = 2, 128, 7, 7
    Cr4 = C4 // 2
    kx4, k5, k6, key = jax.random.split(key, 4)
    x4 = jax.random.normal(kx4, (B4, C4, H4, W4), dtype=jnp.float32)
    w1c = jax.random.normal(k5, (Cr4, C4), dtype=jnp.float32) * 0.1
    w2c = jax.random.normal(k6, (C4, Cr4), dtype=jnp.float32) * 0.1
    out4 = jax.block_until_ready(se_block(x4, w1c.T, w2c.T))      # auto -> nhwc
    ref4 = _reference(x4, w1c, w2c)
    assert jnp.allclose(out4, ref4, atol=1e-5, rtol=1e-5), "mismatch (case 4: nhwc)"

    # ---- Case 5: two-pass fallback (force: even bt=1 slab exceeds the budget) ----
    B5, C5, H5, W5 = 2, 8, 32, 32                   # slab = 32 KiB > 16 KiB budget
    Cr5 = C5 // 2
    kx5, k7, k8, key = jax.random.split(key, 4)
    x5 = jax.random.normal(kx5, (B5, C5, H5, W5), dtype=jnp.float32)
    w1d = jax.random.normal(k7, (Cr5, C5), dtype=jnp.float32) * 0.5
    w2d = jax.random.normal(k8, (C5, Cr5), dtype=jnp.float32) * 0.5
    out5 = jax.block_until_ready(
        se_block(x5, w1d.T, w2d.T, block_budget_bytes=16 * 1024))
    ref5 = _reference(x5, w1d, w2d)
    assert jnp.allclose(out5, ref5, atol=1e-5, rtol=1e-5), "mismatch (case 5: fallback)"

    print("KERNEL_OK")
</pallas_src>

<mosaic_0001>
module attributes {stable_mosaic.version = 11 : i64} {
  func.func @se_kernel(%arg0: i32, %arg1: memref<1x4x256xf32, #tpu.memory_space<vmem>>, %arg2: memref<4x2xf32, #tpu.memory_space<vmem>>, %arg3: memref<2x4xf32, #tpu.memory_space<vmem>>, %arg4: memref<1x4x256xf32, #tpu.memory_space<vmem>>) attributes {dimension_semantics = [#tpu.dimension_semantics<parallel>], iteration_bounds = array<i64: 2>, scalar_prefetch = 0 : i64, scratch_operands = 0 : i64, tpu.core_type = #tpu.core_type<tc>, window_params = [{transform_indices = @transform_0, window_bounds = array<i64: 1, 4, 256>}, {pipeline_mode = #tpu.pipeline_mode<synchronous>, transform_indices = @transform_1, window_bounds = array<i64: 4, 2>}, {pipeline_mode = #tpu.pipeline_mode<synchronous>, transform_indices = @transform_2, window_bounds = array<i64: 2, 4>}, {transform_indices = @transform_3, window_bounds = array<i64: 1, 4, 256>}]} {
    %c0 = arith.constant 0 : index
    %c0_0 = arith.constant 0 : index
    %c0_1 = arith.constant 0 : index
    %0 = vector.load %arg1[%c0, %c0_0, %c0_1] : memref<1x4x256xf32, #tpu.memory_space<vmem>>, vector<1x4x256xf32>
    %cst = arith.constant dense<0.000000e+00> : vector<1x4xf32>
    %1 = vector.multi_reduction <add>, %0, %cst [2] : vector<1x4x256xf32> to vector<1x4xf32>
    %cst_2 = arith.constant 3.906250e-03 : f32
    %2 = vector.broadcast %cst_2 : f32 to vector<1x4xf32>
    %3 = arith.mulf %1, %2 : vector<1x4xf32>
    %c0_3 = arith.constant 0 : index
    %c0_4 = arith.constant 0 : index
    %4 = vector.load %arg2[%c0_3, %c0_4] : memref<4x2xf32, #tpu.memory_space<vmem>>, vector<4x2xf32>
    %cst_5 = arith.constant dense<0.000000e+00> : vector<1x2xf32>
    %5 = tpu.matmul %3, %4, %cst_5 {dimension_numbers = #tpu.dot_dimension_numbers<[1], [0], [0], [1], [0, 0, 1, 1], [], []>} : vector<1x4xf32>, vector<4x2xf32>, vector<1x2xf32> -> vector<1x2xf32>
    %cst_6 = arith.constant 0.000000e+00 : f32
    %6 = vector.broadcast %cst_6 : f32 to vector<1x2xf32>
    %7 = arith.maximumf %5, %6 : vector<1x2xf32>
    %c0_7 = arith.constant 0 : index
    %c0_8 = arith.constant 0 : index
    %8 = vector.load %arg3[%c0_7, %c0_8] : memref<2x4xf32, #tpu.memory_space<vmem>>, vector<2x4xf32>
    %cst_9 = arith.constant dense<0.000000e+00> : vector<1x4xf32>
    %9 = tpu.matmul %7, %8, %cst_9 {dimension_numbers = #tpu.dot_dimension_numbers<[1], [0], [0], [1], [0, 0, 1, 1], [], []>} : vector<1x2xf32>, vector<2x4xf32>, vector<1x4xf32> -> vector<1x4xf32>
    %10 = arith.negf %9 : vector<1x4xf32>
    %11 = math.exp %10 : vector<1x4xf32>
    %cst_10 = arith.constant 1.000000e+00 : f32
    %12 = vector.broadcast %cst_10 : f32 to vector<1x4xf32>
    %13 = arith.addf %12, %11 : vector<1x4xf32>
    %14 = arith.divf %12, %13 : vector<1x4xf32>
    %15 = vector.shape_cast %14 : vector<1x4xf32> to vector<1x4x1xf32>
    %16 = vector.shape_cast %15 : vector<1x4x1xf32> to vector<1x4x1xf32>
    %17 = vector.broadcast %16 : vector<1x4x1xf32> to vector<1x4x256xf32>
    %c0_11 = arith.constant 0 : index
    %c0_12 = arith.constant 0 : index
    %c0_13 = arith.constant 0 : index
    %18 = vector.load %arg1[%c0_11, %c0_12, %c0_13] : memref<1x4x256xf32, #tpu.memory_space<vmem>>, vector<1x4x256xf32>
    %19 = arith.mulf %18, %17 : vector<1x4x256xf32>
    %c0_14 = arith.constant 0 : index
    %c0_15 = arith.constant 0 : index
    %c0_16 = arith.constant 0 : index
    %20 = vector.load %arg4[%c0_14, %c0_15, %c0_16] : memref<1x4x256xf32, #tpu.memory_space<vmem>>, vector<1x4x256xf32>
    tpu.vector_store %arg4[%c0_14, %c0_15, %c0_16], %19 {strides = array<i32>} : memref<1x4x256xf32, #tpu.memory_space<vmem>>, vector<1x4x256xf32>,
    return
  }
  func.func @transform_0(%arg0: i32) -> (i32, i32, i32) {
    %c0_i32 = arith.constant 0 : i32
    %c0_i32_0 = arith.constant 0 : i32
    %c0_i32_1 = arith.constant 0 : i32
    return %arg0, %c0_i32, %c0_i32_0 : i32, i32, i32
  }
  func.func @transform_1(%arg0: i32) -> (i32, i32) {
    %c0_i32 = arith.constant 0 : i32
    %c0_i32_0 = arith.constant 0 : i32
    %c0_i32_1 = arith.constant 0 : i32
    return %c0_i32, %c0_i32_0 : i32, i32
  }
  func.func @transform_2(%arg0: i32) -> (i32, i32) {
    %c0_i32 = arith.constant 0 : i32
    %c0_i32_0 = arith.constant 0 : i32
    %c0_i32_1 = arith.constant 0 : i32
    return %c0_i32, %c0_i32_0 : i32, i32
  }
  func.func @transform_3(%arg0: i32) -> (i32, i32, i32) {
    %c0_i32 = arith.constant 0 : i32
    %c0_i32_0 = arith.constant 0 : i32
    %c0_i32_1 = arith.constant 0 : i32
    return %arg0, %c0_i32, %c0_i32_0 : i32, i32, i32
  }
}

</mosaic_0001>

<bundles_post_ra>
// kernel: tpu_custom_call.1
= control target key start
LH: loop header
LB: loop body
LE: loop exit
PB: predicated region body
PF: predicated region fallthrough
CT: control target
= control target key end

     0   :  { %8 = vsyncpa [#allocation3], 0  ;;  %s830_s0 = inlined_call_operand.hbm [shape: f32[2,4,256], index: 0, kind: input, shape index: {}]   ;;  %s831_s1 = inlined_call_operand.vmem [shape: f32[4,2], index: 1, kind: input, shape index: {}]   ;;  %s832_s2 = inlined_call_operand.vmem [shape: f32[2,4], index: 2, kind: input, shape index: {}]   ;;  %s833_s3 = inlined_call_operand.hbm [shape: f32[2,4,256], index: 3, kind: output, shape index: {}]  }
   0x1   :  { %10 = vsyncpa [#allocation3 + $0x1], 0 }
   0x2   :  { %11 = vsyncpa [#allocation4], 0 }
   0x3   :  { %13 = vsyncpa [#allocation4 + $0x1], 0  ;;  %s679_s12 = smov 0   ;;  %s681_s13 = smov 0  }
   0x4   :  { %s683_s14 = smov 0   ;;  %s685_s15 = smov 0  }
   0x5 LB: > { %s700_s16 = sadd.s32 4294967295, %s652_s15   ;;  %s471_s17 = sadd.s32 4294967294, %s652_s15   ;;  %s652_s15 = sphi %s685_s15, %s850_s15   ;;  %s648_s14 = sphi %s683_s14, %s849_s14   ;;  %s644_s13 = sphi %s681_s13, %s848_s13   ;;  %s640_s12 = sphi %s679_s12, %s847_s12  }
   0x6   : > { %s704_s18 = sadd.s32 1, %s652_s15   ;;  %s26_s19 = sadd.s32 1, %s648_s14 }
   0x7   : > { %s23_s20 = ssub.s32 %s652_s15, %s704_s18  ;;  %p33_p0 = scmp.ne.s32.totalorder %s648_s14, %s644_s13 }
   0x8   : > { %p24_p1 = scmp.eq.s32.totalorder %s23_s20, 0  ;;  %p34_p2 = scmp.eq.s32.totalorder %s652_s15, 0 }
   0x9   : > { %p39_p3 = scmp.ne.s32.totalorder %s644_s13, %s640_s12  ;;  %p40_p4 = scmp.eq.s32.totalorder %s700_s16, 0 }
   0xa   : > { %s716_s21 = scalar_select %p24_p1, %s648_s14, %s26_s19  }
   0xb   : > { %p718_p5 = por %p34_p2, %p33_p0  ;;  %p722_p6 = por %p40_p4, %p39_p3 }
   0xc   : > { %p105_p7 = scmp.eq.s32.totalorder %s700_s16, 1  ;;  %p111_p8 = scmp.eq.s32.totalorder %s471_s17, 1 }
   0xd   : > { %s837_s23 = scalar_select %p722_p6, 1, 0 }
   0xe   : > { %p518_p10 = scmp.lt.s32.totalorder %s652_s15, 2  ;;  %p729_p11 = por %p105_p7, %p33_p0 }
   0xf   : > { %p733_p12 = por %p111_p8, %p39_p3  ;;  %s137_s26 = sand.u32 1, %s648_s14  }
  0x10   : > { %s838_s24 = scalar_select %p729_p11, 1, 0 }
  0x11   : > { %s839_s25 = scalar_select %p733_p12, 1, 0 }
  0x12   : > { %s490_s27 = sshll.u32 %s652_s15, 7  ;;  %s474_s28 = sshll.u32 %s137_s26, 3 }
  0x13   : > { %s742_s4 = scalar_lea.hbm %s830_s0, %s490_s27  ;;  %s141_s5 = scalar_lea.vmem [#allocation2], %s474_s28 }
  0x14   : > { %s149_s6 = sshll.u32 %s141_s5, 4  ;;  %p746_p13 = pnand %p518_p10, %p718_p5  ;;  %s750_s6 = int_to_ptr.vmem [resolvable:$true] %s149_s6 }
  0x15   : > { %s138_s8 = scalar_lea.sflag [#allocation3], %s137_s26  ;;  %s560_s9 = scalar_lea.hbm %s742_s4, 128 }
  0x16   : > { %p561_p2 = scmp.ne.s32.totalorder %s742_s4, %s560_s9  ;;  %p562_p3 = pneg %p746_p13 }
  0x17   : > { %s565_s17 = scalar_lea.hbm %s830_s0, 256  ;;  %p566_p5 = scmp.lt.s32.totalorder %s742_s4, %s830_s0 }
  0x18   : > { %p563_p4 = pnand %p562_p3, %p561_p2  ;;  %p567_p8 = scmp.lt.s32.totalorder %s565_s17, %s560_s9 }
  0x1a   : > { %p564_p7 = pneg %p563_p4  ;;  %p568_p10 = por %p567_p8, %p566_p5 }
  0x1c   : > { %p569_p9 = pnand %p568_p10, %p564_p7 }
  0x1e   : > { %572 = shalt.err (!%p569_p9)
}
  0x1f   : > { %s573_s22 = scalar_lea.vmem %s750_s6, 128  ;;  %s654_s26 = smov [#allocation2]  }
  0x20   : > { %p574_p0 = scmp.ne.s32.totalorder %s750_s6, %s573_s22  ;;  %s578_s27 = sshll.u32 %s654_s26, 4  ;;  %s579_s27 = int_to_ptr.vmem [resolvable:$false] %s578_s27 }
  0x21   : > { %s580_s28 = scalar_lea.vmem %s579_s27, 256  ;;  %p581_p4 = scmp.lt.s32.totalorder %s750_s6, %s579_s27 }
  0x22   : > { %p576_p1 = pnand %p574_p0, %p562_p3  ;;  %p582_p12 = scmp.lt.s32.totalorder %s580_s28, %s573_s22 }
  0x24   : > { %p577_p2 = pneg %p576_p1  ;;  %p583_p11 = por %p582_p12, %p581_p4 }
  0x26   : > { %p584_p6 = pnand %p583_p11, %p577_p2 }
  0x28   : > { %587 = shalt.err (!%p584_p6)
}
  0x29   : > { %513 = dma.hbm_to_vmem [thread:$0]  (!%p746_p13), %s742_s4, 128, %s750_s6, %s138_s8  }
  0x2a   : > { %p841_p9 = scmp.lt.s32.totalorder %s652_s15, 3  ;;  %p842_p7 = scmp.ge.s32.totalorder %s652_s15, 1 }
  0x2c   : > { %p155_p0 = pnand %p842_p7, %p841_p9 }
  0x2d   : > { %s777_s29 = sand.u32 (!%p155_p0), 1, %s644_s13   ;;  %p843_p6 = scmp.ne.s32.totalorder (!%p155_p0), %s837_s23, 0 }
  0x2e   : > { %158 = sbr.rel (%p155_p0) target bundleno = 754 (0x2f2), region = 32  ;;  %s478_s30 = sshll.u32 (!%p155_p0), %s777_s29, 3 }
  0x2f   : > { %s161_s5 = scalar_lea.sflag (!%p155_p0), [#allocation3], %s777_s29  ;;  %s164_s7 = scalar_lea.vmem (!%p155_p0), [#allocation2], %s478_s30 }
  0x33   : > { %631 = dma.done.wait (%p843_p6), %s161_s5, 128  }
  0x34   : > { %633 = vsyncadd (%p843_p6), %s161_s5, 4294967168  ;;  %vm191_vm0 = vcmask 1043456   ;;  %v187_v0 = vld [vmem:[%s164_s7] sm:$0xff]  ;;  %v655_v5 = vmov 0.0   ;;  %vm656_vm1 = vmmov 0   ;;  %v200_v7 = vlaneseq  ;;  %s491_s9 = sshll.u32 %s700_s16, 7 }
  0x35   : > { %v189_v1 = vcombine.high %v187_v0, %v187_v0  ;;  %v192_v2 = vsel %vm191_vm0, %v187_v0, 0.0  ;;  %496 = vmatprep.subr.mxu0 %v655_v5  ;;  %v198_v6 = vld [vmem:[%s831_s1] sm:$0xf]  ;;  %501 = vmatprep.subr.mxu1 %v655_v5  ;;  %vm206_vm2 = vcmask 31744   ;;  %vm288_vm3 = vcmask 1041408   ;;  %s186_s10 = scalar_lea.vmem [#allocation5], %s478_s30  ;;  %s399_s20 = scalar_lea.hbm %s833_s3, %s491_s9 }
  0x36   : > { %497 = vmatpush3.msk.msra.mxu0 %vm191_vm0, %v198_v6  ;;  %498 = vmatprep.mubr.msk.f32.mxu0 %vm656_vm1, %v655_v5  ;;  %v201_v8 = vand.u32 127, %v200_v7  ;;  %v203_v9 = vshrl.u32 %v200_v7, 7  ;;  %v283_v14 = vld [vmem:[%s832_s2] sm:$0x3]  ;;  %vm284_vm4 = vcmask 15360   ;;  %s401_s11 = sshll.u32 %s186_s10, 4  ;;  %s402_s11 = int_to_ptr.vmem [resolvable:$true] %s401_s11 }
  0x37   : > { %v193_v3 = vsel %vm191_vm0, %v189_v1, 0.0  ;;  %503 = vmatprep.mubr.msk.f32.mxu1 %vm656_vm1, %v655_v5  ;;  %502 = vmatpush3.msk.msra.mxu1 %vm288_vm3, %v283_v14  ;;  %v657_v26 = vmov 839922192   ;;  %s387_s22 = scalar_lea.sflag [#allocation4], %s777_s29  ;;  %s588_s26 = scalar_lea.vmem %s402_s11, 128 }
  0x38   : > { %v194_v4 = vadd.f32 %v193_v3, %v192_v2  ;;  %v204_v10 = vsub.s32 %v201_v8, %v203_v9  ;;  %v370_v23 = vsub.s32 0, %v203_v9  ;;  %v377_v27 = vunpack.c.l.s4 %v657_v26  ;;  %p589_p11 = scmp.ne.s32.totalorder %s402_s11, %s588_s26  ;;  %p844_p12 = scmp.ne.s32.totalorder %s838_s24, 0 }
  0x39   : > { %s658_s27 = smov [#allocation5]  }
  0x3a   : > { %195 = vadd.xlane.f32.xlu0 %v194_v4  ;;  %v378_v28 = vunpack.c.0.s8 %v377_v27  ;;  %p590_p13 = pnand %p589_p11, %p844_p12  ;;  %s592_s28 = sshll.u32 %s658_s27, 4  ;;  %s593_s28 = int_to_ptr.vmem [resolvable:$false] %s592_s28 }
  0x3b   : > { %s594_s16 = scalar_lea.vmem %s593_s28, 256  ;;  %p595_p3 = scmp.lt.s32.totalorder %s402_s11, %s593_s28 }
  0x3c   : > { %v381_v29 = vsub.s32 %v378_v28, %v203_v9  ;;  %p591_p1 = pneg %p590_p13  ;;  %p596_p5 = scmp.lt.s32.totalorder %s594_s16, %s588_s26 }
  0x3e   : > { %p597_p8 = por %p596_p5, %p595_p3 }
  0x40   : > { %p598_p10 = pnand %p597_p8, %p591_p1 }
  0xc3   : > { %v196_v11 = vpop.xlane.xlu0 %195 }
  0xc4   : > { %v197_v12 = vmul.f32 0.00390625, %v196_v11 }
  0xc6   : > { %v205_v13 = vrot.slane %v197_v12, %v204_v10 }
  0xc8   : > { %499 = vmatmul.mubr.msk.f32.vlgmr.msra.gmra.mxu0 %vm206_vm2, %v205_v13 }
 0x188   : > { %v278_v15 = vpop.f32.mrf.mxu0 }
 0x189   : > { %v282_v16 = vmax.f32 %v278_v15, 0.0 }
 0x18a   : > { %v500_v17 = vpop.f32.mrf.mxu0 }
 0x18b   : > { %504 = vmatmul.mubr.msk.f32.vlgmr.msra.gmra.mxu1 %vm284_vm4, %v282_v16 }
 0x24b   : > { %v358_v18 = vpop.f32.mrf.mxu1 }
 0x24c   : > { %v484_v19 = vmul.f32 -1.442695, %v358_v18 }
 0x24d   : > { %v505_v20 = vpop.f32.mrf.mxu1 }
 0x24e   : > { %556 = vpow2.f32 %v484_v19 }
 0x25b   : > { %v557_v21 = vpop.eup %556 }
 0x25c   : > { %v365_v22 = vadd.f32 1.0, %v557_v21 }
 0x25e   : > { %558 = vrcp.f32 %v365_v22 }
 0x26b   : > { %v559_v24 = vpop.eup %558 }
 0x26c   : > { %v371_v25 = vrot.slane %v559_v24, %v370_v23 }
 0x26e   : > { %373 = vbcast.lane.b32.xlu0 %v371_v25, 256 }
 0x2e0   : > { %v374_v30 = vpop.permute.xlu0 %373 }
 0x2e1   : > { %v382_v31 = vrot.slane %v374_v30, %v381_v29 }
 0x2e3   : > { %v384_v32 = vmul.f32 %v382_v31, %v187_v0 }
 0x2e5   : > { %385 = vst [vmem:[%s186_s10] sm:$0xff] %v384_v32 }
 0x2e6   : > { %601 = shalt.err (!%p598_p10)
}
 0x2e7   : > { %s602_s30 = scalar_lea.hbm %s399_s20, 128  ;;  %s606_s7 = scalar_lea.hbm %s833_s3, 256 }
 0x2e8   : > { %p603_p2 = scmp.ne.s32.totalorder %s399_s20, %s602_s30  ;;  %p607_p7 = scmp.lt.s32.totalorder %s399_s20, %s833_s3 }
 0x2e9   : > { %p608_p0 = scmp.lt.s32.totalorder %s606_s7, %s602_s30 }
 0x2ea   : > { %p604_p4 = pnand %p603_p2, %p844_p12 }
 0x2eb   : > { %p609_p6 = por %p608_p0, %p607_p7 }
 0x2ec   : > { %p605_p9 = pneg %p604_p4 }
 0x2ee   : > { %p610_p11 = pnand %p609_p6, %p605_p9 }
 0x2f0   : > { %613 = shalt.err (!%p610_p11)
}
 0x2f1   : > { %508 = dma.vmem_to_hbm [thread:$0]  (%p844_p12), %s402_s11, 128, %s399_s20, %s387_s22  }
 0x2f2 PF: > { %s413_s23 = sand.u32 1, %s640_s12   ;;  %p845_p13 = scmp.ne.s32.totalorder %s839_s25, 0 }
 0x2f3   : > { %p846_p1 = scmp.ge.s32.totalorder %s652_s15, 2  ;;  %s414_s8 = scalar_lea.sflag [#allocation4], %s413_s23 }
 0x2f5   : > { %p515_p3 = pnand %p846_p1, %p845_p13 }
 0x2f7   : > { %p516_p5 = pneg %p515_p3 }
 0x2f9   : > { %635 = dma.done.wait (%p516_p5), %s414_s8, 128  }
 0x2fa   : > { %637 = vsyncadd (%p516_p5), %s414_s8, 4294967168  ;;  %p16_p8 = scmp.ge.s32.totalorder %s704_s18, 4   ;;  %s847_s12 = smov %s644_s13 }
 0x2fb   : > { %s848_s13 = smov %s648_s14  ;;  %s849_s14 = smov %s716_s21 }
 0x2fc   : > { %s850_s15 = smov %s704_s18  ;;  %18 = sbr.rel (!%p16_p8) target bundleno = 5 (0x5), region = 77 }
 0x301   :  { %419 = vsyncpa [#allocation3], 1 }
 0x302   :  { %421 = vsyncpa [#allocation3 + $0x1], 1 }
 0x303   :  { %422 = vsyncpa [#allocation4], 1 }
 0x304   :  { %424 = vsyncpa [#allocation4 + $0x1], 1 }

</bundles_post_ra>
